<compile_context>
chip_gen: v6e
topology: v6e:2x2x1
jax: 0.10.0
libtpu: 0.0.40
codegen_flags: <defaults>
</compile_context>

<pallas_src>
import functools

import jax
import jax.numpy as jnp
from jax import lax
from jax.experimental import pallas as pl
from jax.experimental.pallas import tpu as pltpu


# --------------------------------------------------------------------------
# Pass 1: fused 1x1-conv projections  [B; C; D] = W_bcd @ x + b_bcd  (bf16 out)
# --------------------------------------------------------------------------
def _proj_kernel(x_ref, w_ref, b_ref, bcd_ref):
    x = x_ref[0]                                                  # (C, TS) f32
    bcd = jnp.dot(w_ref[...], x,
                  preferred_element_type=jnp.float32) + b_ref[...]
    bcd_ref[0] = bcd.astype(jnp.bfloat16)                         # (3C, TS)


# --------------------------------------------------------------------------
# Pass 2: flash-style spatial attention with online softmax.
# --------------------------------------------------------------------------
def _attn_kernel(bq_ref, ck_ref, dk_ref, xq_ref, alpha_ref, o_ref,
                 m_sc, l_sc, acc_sc, *, tk, s_valid, s_pad, bf16_exp):
    k = pl.program_id(2)
    nk = pl.num_programs(2)

    @pl.when(k == 0)
    def _init():
        # -1e30 acts as -inf here: logits are finite f32 (bf16 operands, f32
        # accumulation), so exp(s - m) underflows cleanly for masked entries.
        m_sc[...] = jnp.full_like(m_sc, -1e30)
        l_sc[...] = jnp.zeros_like(l_sc)
        acc_sc[...] = jnp.zeros_like(acc_sc)

    bq = bq_ref[0]                                                # (C, TQ) bf16
    ck = ck_ref[0]                                                # (C, TK) bf16
    dk = dk_ref[0]                                                # (C, TK) bf16

    # scores[key, query] = sum_c C[c, key] * B[c, query]   (attn^T tile)
    s = lax.dot_general(ck, bq, (((0,), (0,)), ((), ())),
                        preferred_element_type=jnp.float32)       # (TK, TQ) f32

    if s_pad != s_valid:  # static gate: only emit mask ops when S was padded
        key_idx = k * tk + lax.broadcasted_iota(jnp.int32, s.shape, 0)
        s = jnp.where(key_idx < s_valid, s, -1e30)

    m_prev = m_sc[...]                                            # (1, TQ)
    m_new = jnp.maximum(m_prev, jnp.max(s, axis=0, keepdims=True))
    corr = jnp.exp(m_prev - m_new)                                # (1, TQ) f32

    if bf16_exp:
        # v6e / v7x: bf16 VPU + EUP -> exp on the big (TK, TQ) tile in bf16,
        # feed the MXU directly; keep the l accumulation in f32.
        p_mm = jnp.exp((s - m_new).astype(jnp.bfloat16))          # (TK, TQ) bf16
        p_sum = jnp.sum(p_mm.astype(jnp.float32), axis=0, keepdims=True)
    else:
        # v5e (no bf16 VPU/EUP): keep elementwise softmax math in f32.
        p = jnp.exp(s - m_new)                                    # (TK, TQ) f32
        p_sum = jnp.sum(p, axis=0, keepdims=True)
        p_mm = p.astype(jnp.bfloat16)

    l_sc[...] = corr * l_sc[...] + p_sum
    acc_sc[...] = corr * acc_sc[...] + jnp.dot(
        dk, p_mm, preferred_element_type=jnp.float32)             # (C, TQ) f32
    m_sc[...] = m_new

    @pl.when(k == nk - 1)
    def _finalize():
        inv_l = pl.reciprocal(l_sc[...], approx=True)             # (1, TQ)
        y = acc_sc[...] * inv_l                                   # (C, TQ)
        o_ref[0] = alpha_ref[0] * y + xq_ref[0]                   # lane-dense store


# --------------------------------------------------------------------------
# Wrapper
# --------------------------------------------------------------------------
def _round_up(v, m):
    return ((v + m - 1) // m) * m


def _vmem_cap_bytes():
    """Per-generation VMEM cap with headroom for Mosaic internal scratch."""
    try:
        info = pltpu.get_tpu_info()
        cap = int(getattr(info, "vmem_capacity_bytes"))
        return max(cap * 3 // 4, 32 * 1024 * 1024)
    except Exception:
        return 48 * 1024 * 1024   # safe on v5e/v6e (128 MiB) and v7x (64 MiB)


def _use_bf16_softmax():
    """bf16 elementwise softmax only where the VPU/EUP support bf16 (v6e/v7x)."""
    try:
        kind = jax.devices()[0].device_kind.lower()
    except Exception:
        return False
    return any(t in kind for t in ("v6", "v7"))


def pam_pallas(x_nchw, wb, bb, wc, bc, wd, bd, alpha, *, tile=512):
    """x_nchw: (N, C, H, W); 1x1-conv weights (C, C), biases (C,), alpha (1,)."""
    n, c, h, w = x_nchw.shape
    s = h * w

    # Channels padded to a multiple of 16 for clean bf16 sublane packing.
    c_pad = _round_up(c, 16)
    pc = c_pad - c

    # Spatial size padded to a multiple of the tile; padded keys are masked in
    # the kernel, padded queries/channels are sliced off at the end.
    tile = min(tile, _round_up(s, 128))
    s_pad = _round_up(s, tile)

    # NCHW is already (N, C, S) after a reshape -- no HBM transposes.
    # NOTE: if upstream activations are already bf16 this f32 upcast (and the
    # residual block's f32 DMA) could be skipped to halve x traffic.
    x_ncs = x_nchw.reshape(n, c, s).astype(jnp.float32)
    x_ncs = jnp.pad(x_ncs, ((0, 0), (0, pc), (0, s_pad - s)))

    def pad_w(wgt):
        return jnp.pad(wgt.astype(jnp.float32), ((0, pc), (0, pc)))

    def pad_b(b_):
        return jnp.pad(b_.astype(jnp.float32), (0, pc)).reshape(c_pad, 1)

    w_bcd = jnp.concatenate([pad_w(wb), pad_w(wc), pad_w(wd)], axis=0)  # (3C, C)
    b_bcd = jnp.concatenate([pad_b(bb), pad_b(bc), pad_b(bd)], axis=0)  # (3C, 1)
    alpha1 = alpha.reshape(1).astype(jnp.float32)

    nt = s_pad // tile
    vmem_cap = _vmem_cap_bytes()

    # ---- pass 1: projection pre-pass (per-batch, per-spatial-tile) ----------
    proj_est = (2 * c_pad * tile * 4                    # x blocks (dbl-buffered)
                + 2 * 3 * c_pad * tile * 2              # bcd output blocks
                + 2 * 4 * (3 * c_pad * c_pad + 3 * c_pad)   # weights + biases
                + 3 * c_pad * tile * 4)                 # matmul temporaries
    bcd = pl.pallas_call(
        _proj_kernel,
        out_shape=jax.ShapeDtypeStruct((n, 3 * c_pad, s_pad), jnp.bfloat16),
        grid_spec=pltpu.PrefetchScalarGridSpec(
            num_scalar_prefetch=0,
            grid=(n, nt),
            in_specs=[
                pl.BlockSpec((1, c_pad, tile), lambda b, i: (b, 0, i)),   # x
                pl.BlockSpec((3 * c_pad, c_pad), lambda b, i: (0, 0)),    # W_bcd
                pl.BlockSpec((3 * c_pad, 1), lambda b, i: (0, 0)),        # b_bcd
            ],
            out_specs=pl.BlockSpec((1, 3 * c_pad, tile), lambda b, i: (b, 0, i)),
        ),
        compiler_params=pltpu.CompilerParams(
            dimension_semantics=("parallel", "parallel"),
            vmem_limit_bytes=int(min(max(2 * proj_est, 16 << 20), vmem_cap)),
        ),
    )(x_ncs, w_bcd, b_bcd)

    # ---- pass 2: flash-style attention --------------------------------------
    tq = tk = tile
    kernel = functools.partial(_attn_kernel, tk=tk, s_valid=s, s_pad=s_pad,
                               bf16_exp=_use_bf16_softmax())

    attn_est = (2 * c_pad * tq * 2                      # B query blocks
                + 2 * 2 * c_pad * tk * 2                # C / D key blocks
                + 2 * c_pad * tq * 4                    # x residual blocks
                + 2 * c_pad * tq * 4                    # output blocks
                + 2 * 8 * tq * 4                        # m / l scratch
                + c_pad * tq * 4                        # acc scratch
                + 4 * tk * tq * 4)                      # logits / exp temporaries
    out_pad = pl.pallas_call(
        kernel,
        out_shape=jax.ShapeDtypeStruct((n, c_pad, s_pad), jnp.float32),
        grid_spec=pltpu.PrefetchScalarGridSpec(
            num_scalar_prefetch=0,
            grid=(n, nt, nt),
            in_specs=[
                pl.BlockSpec((1, c_pad, tq), lambda b, i, j: (b, 0, i)),  # B (q)
                pl.BlockSpec((1, c_pad, tk), lambda b, i, j: (b, 1, j)),  # C (k)
                pl.BlockSpec((1, c_pad, tk), lambda b, i, j: (b, 2, j)),  # D (k)
                pl.BlockSpec((1, c_pad, tq), lambda b, i, j: (b, 0, i)),  # x resid
                pl.BlockSpec(memory_space=pltpu.MemorySpace.SMEM),        # alpha
            ],
            out_specs=pl.BlockSpec((1, c_pad, tq), lambda b, i, j: (b, 0, i)),
            scratch_shapes=[
                pltpu.VMEM((1, tq), jnp.float32),       # m
                pltpu.VMEM((1, tq), jnp.float32),       # l
                pltpu.VMEM((c_pad, tq), jnp.float32),   # acc
            ],
        ),
        compiler_params=pltpu.CompilerParams(
            # No cross-query-tile state anymore, so batch AND query-tile axes
            # are parallel (uses both v7x TensorCores even at N=1); the key
            # axis stays "arbitrary" for the online-softmax accumulator.
            dimension_semantics=("parallel", "parallel", "arbitrary"),
            vmem_limit_bytes=int(min(max(2 * attn_est, 16 << 20), vmem_cap)),
        ),
    )(bcd, bcd, bcd, x_ncs, alpha1)

    return out_pad[:, :c, :s].reshape(n, c, h, w)


# --------------------------------------------------------------------------
# Plain-JAX reference mirroring the PyTorch forward exactly (f32).
# --------------------------------------------------------------------------
def pam_reference(x_nchw, wb, bb, wc, bc, wd, bd, alpha):
    n, c, h, w = x_nchw.shape
    s = h * w

    def conv1x1(x, wgt, bias):
        return jnp.einsum('oc,nchw->nohw', wgt, x) + bias[None, :, None, None]

    B = jnp.transpose(conv1x1(x_nchw, wb, bb).reshape(n, c, s), (0, 2, 1))  # (N,S,C)
    C = conv1x1(x_nchw, wc, bc).reshape(n, c, s)                            # (N,C,S)
    D = jnp.transpose(conv1x1(x_nchw, wd, bd).reshape(n, c, s), (0, 2, 1))  # (N,S,C)
    attn = jax.nn.softmax(jnp.einsum('nsc,ncp->nsp', B, C), axis=-1)        # (N,S,S)
    y = jnp.einsum('nsp,npc->nsc', attn, D)                                 # (N,S,C)
    y = jnp.transpose(y, (0, 2, 1)).reshape(n, c, h, w)
    return alpha.reshape(()) * y + x_nchw


if __name__ == "__main__":
    key = jax.random.PRNGKey(0)
    n, c, h, w = 2, 4, 16, 16

    ks = jax.random.split(key, 8)
    x = jax.random.normal(ks[0], (n, c, h, w), dtype=jnp.float32)
    wb = jax.random.normal(ks[1], (c, c), dtype=jnp.float32) * 0.2
    bb = jax.random.normal(ks[2], (c,), dtype=jnp.float32) * 0.1
    wc = jax.random.normal(ks[3], (c, c), dtype=jnp.float32) * 0.2
    bc = jax.random.normal(ks[4], (c,), dtype=jnp.float32) * 0.1
    wd = jax.random.normal(ks[5], (c, c), dtype=jnp.float32) * 0.2
    bd = jax.random.normal(ks[6], (c,), dtype=jnp.float32) * 0.1
    # nn.Parameter(torch.zeros(1)) initializes alpha to 0; use a nonzero value
    # so the attention path is actually exercised by the check.
    alpha = jnp.array([0.5], dtype=jnp.float32)

    out = pam_pallas(x, wb, bb, wc, bc, wd, bd, alpha)
    out = jax.block_until_ready(out)

    ref = pam_reference(x, wb, bb, wc, bc, wd, bd, alpha)
    assert out.shape == (n, c, h, w)
    err = jnp.max(jnp.abs(out - ref))
    # bf16 MXU operands (+ bf16 exp on v6e/v7x) and the approximate reciprocal
    # introduce small numeric differences versus the f32 reference.
    assert jnp.allclose(out, ref, atol=3e-2, rtol=3e-2), f"max abs err = {err}"

    print("KERNEL_OK")
</pallas_src>

<mosaic_0001>
module attributes {stable_mosaic.version = 11 : i64} {
  func.func @_proj_kernel(%arg0: i32, %arg1: i32, %arg2: memref<1x16x256xf32, #tpu.memory_space<vmem>>, %arg3: memref<48x16xf32, #tpu.memory_space<vmem>>, %arg4: memref<48x1xf32, #tpu.memory_space<vmem>>, %arg5: memref<1x48x256xbf16, #tpu.memory_space<vmem>>) attributes {dimension_semantics = [#tpu.dimension_semantics<parallel>, #tpu.dimension_semantics<parallel>], iteration_bounds = array<i64: 2, 1>, scalar_prefetch = 0 : i64, scratch_operands = 0 : i64, tpu.core_type = #tpu.core_type<tc>, window_params = [{transform_indices = @transform_0, window_bounds = array<i64: 1, 16, 256>}, {pipeline_mode = #tpu.pipeline_mode<synchronous>, transform_indices = @transform_1, window_bounds = array<i64: 48, 16>}, {pipeline_mode = #tpu.pipeline_mode<synchronous>, transform_indices = @transform_2, window_bounds = array<i64: 48, 1>}, {transform_indices = @transform_3, window_bounds = array<i64: 1, 48, 256>}]} {
    %c0 = arith.constant 0 : index
    %c0_0 = arith.constant 0 : index
    %c0_1 = arith.constant 0 : index
    %0 = vector.load %arg2[%c0, %c0_0, %c0_1] : memref<1x16x256xf32, #tpu.memory_space<vmem>>, vector<1x16x256xf32>
    %1 = vector.shape_cast %0 : vector<1x16x256xf32> to vector<16x256xf32>
    %c0_2 = arith.constant 0 : index
    %c0_3 = arith.constant 0 : index
    %2 = vector.load %arg3[%c0_2, %c0_3] : memref<48x16xf32, #tpu.memory_space<vmem>>, vector<48x16xf32>
    %cst = arith.constant dense<0.000000e+00> : vector<48x256xf32>
    %3 = tpu.matmul %2, %1, %cst {dimension_numbers = #tpu.dot_dimension_numbers<[1], [0], [0], [1], [0, 0, 1, 1], [], []>} : vector<48x16xf32>, vector<16x256xf32>, vector<48x256xf32> -> vector<48x256xf32>
    %c0_4 = arith.constant 0 : index
    %c0_5 = arith.constant 0 : index
    %4 = vector.load %arg4[%c0_4, %c0_5] : memref<48x1xf32, #tpu.memory_space<vmem>>, vector<48x1xf32>
    %5 = vector.broadcast %4 : vector<48x1xf32> to vector<48x256xf32>
    %6 = arith.addf %3, %5 : vector<48x256xf32>
    %7 = arith.truncf %6 : vector<48x256xf32> to vector<48x256xbf16>
    %c0_6 = arith.constant 0 : index
    %c0_7 = arith.constant 0 : index
    %c0_8 = arith.constant 0 : index
    %8 = vector.load %arg5[%c0_6, %c0_7, %c0_8] : memref<1x48x256xbf16, #tpu.memory_space<vmem>>, vector<1x48x256xbf16>
    %9 = vector.shape_cast %8 : vector<1x48x256xbf16> to vector<48x256xbf16>
    %10 = vector.shape_cast %7 : vector<48x256xbf16> to vector<1x48x256xbf16>
    tpu.vector_store %arg5[%c0_6, %c0_7, %c0_8], %10 {strides = array<i32>} : memref<1x48x256xbf16, #tpu.memory_space<vmem>>, vector<1x48x256xbf16>,
    return
  }
  func.func @transform_0(%arg0: i32, %arg1: i32) -> (i32, i32, i32) {
    %c0_i32 = arith.constant 0 : i32
    %c0_i32_0 = arith.constant 0 : i32
    return %arg0, %c0_i32, %arg1 : i32, i32, i32
  }
  func.func @transform_1(%arg0: i32, %arg1: i32) -> (i32, i32) {
    %c0_i32 = arith.constant 0 : i32
    %c0_i32_0 = arith.constant 0 : i32
    %c0_i32_1 = arith.constant 0 : i32
    return %c0_i32, %c0_i32_0 : i32, i32
  }
  func.func @transform_2(%arg0: i32, %arg1: i32) -> (i32, i32) {
    %c0_i32 = arith.constant 0 : i32
    %c0_i32_0 = arith.constant 0 : i32
    %c0_i32_1 = arith.constant 0 : i32
    return %c0_i32, %c0_i32_0 : i32, i32
  }
  func.func @transform_3(%arg0: i32, %arg1: i32) -> (i32, i32, i32) {
    %c0_i32 = arith.constant 0 : i32
    %c0_i32_0 = arith.constant 0 : i32
    return %arg0, %c0_i32, %arg1 : i32, i32, i32
  }
}

</mosaic_0001>

<bundles_post_ra>
// kernel: tpu_custom_call.1
= control target key start
LH: loop header
LB: loop body
LE: loop exit
PB: predicated region body
PF: predicated region fallthrough
CT: control target
= control target key end

     0   :  { %8 = vsyncpa [#allocation3], 0  ;;  %s862_s0 = inlined_call_operand.vmem [shape: f32[2,16,256], index: 0, kind: input, shape index: {}]   ;;  %s863_s1 = inlined_call_operand.vmem [shape: f32[48,16], index: 1, kind: input, shape index: {}]   ;;  %s864_s2 = inlined_call_operand.vmem [shape: f32[48,1], index: 2, kind: input, shape index: {}]   ;;  %s865_s3 = inlined_call_operand.hbm [shape: bf16[2,48,256], index: 3, kind: output, shape index: {}]  }
   0x1   :  { %10 = vsyncpa [#allocation3 + $0x1], 0  ;;  %s702_s12 = smov 0   ;;  %s704_s13 = smov 0  }
   0x2   :  { %s706_s14 = smov 0   ;;  %s708_s15 = smov 0  }
   0x3   :  { %s710_s16 = smov 0   ;;  %s712_s17 = smov 0  }
   0x4 LB: > { %s503_s18 = sadd.s32 4294967295, %s675_s17   ;;  %s504_s19 = sadd.s32 4294967294, %s675_s17   ;;  %s675_s17 = sphi %s712_s17, %s16_s17   ;;  %s671_s16 = sphi %s710_s16, %s872_s16   ;;  %s667_s15 = sphi %s708_s15, %s871_s15   ;;  %s663_s14 = sphi %s706_s14, %s870_s14   ;;  %s659_s13 = sphi %s704_s13, %s869_s13   ;;  %s655_s12 = sphi %s702_s12, %s868_s12  }
   0x5   : > { %s28_s20 = sadd.s32 1, %s671_s16  ;;  %s107_s21 = sadd.s32 1, %s663_s14 }
   0x6   : > { %p30_p0 = scmp.ge.s32.totalorder %s28_s20, 2  ;;  %p117_p1 = scmp.ne.s32.totalorder %s663_s14, %s659_s13 }
   0x7   : > { %p118_p2 = scmp.eq.s32.totalorder %s503_s18, 1  ;;  %p123_p3 = scmp.ne.s32.totalorder %s659_s13, %s655_s12 }
   0x8   : > { %s874_s20 = smov (%p30_p0, %s28_s20), 0  ;;  %p124_p5 = scmp.eq.s32.totalorder %s504_s19, 1 }
   0x9   : > { %p742_p4 = por %p118_p2, %p117_p1  ;;  %s102_s23 = ssub.s32 %s671_s16, %s874_s20 }
   0xa   : > { %p507_p6 = scmp.ge.s32.totalorder %s675_s17, 1  ;;  %p105_p7 = scmp.eq.s32.totalorder %s102_s23, 0 }
   0xb   : > { %p749_p8 = por %p124_p5, %p123_p3  ;;  %p161_p9 = scmp.lt.s32.totalorder %s675_s17, 3 }
   0xc   : > { %s755_s25 = scalar_select %p105_p7, %s663_s14, %s107_s21  }
   0xd   : > { %p162_p10 = pnand %p507_p6, %p161_p9 }
   0xe   : > { %p190_p11 = scmp.lt.s32.totalorder (!%p162_p10), %s667_s15, 1  ;;  %s186_s11 = sand.u32 (!%p162_p10), 1, %s659_s13  }
   0xf   : > { %165 = sbr.rel (%p162_p10) target bundleno = 250 (0xfa), region = 32  ;;  %s817_s28 = scalar_lea.sflag (!%p162_p10), [#allocation3], %s186_s11 }
  0x10   : > { %s536_s18 = smul.u32 (!%p162_p10), 48, %s186_s11  ;;  %s679_s30 = smov (!%p162_p10), [#allocation2]  }
  0x11   : > { %s537_s21 = smul.u32 (!%p162_p10), 768, %s667_s15 }
  0x12   : > { %s188_s19 = scalar_lea.vmem (!%p162_p10), [#allocation2], %s536_s18 }
  0x13   : > { %s424_s23 = sshll.u32 (!%p162_p10), %s188_s19, 4  ;;  %s808_s23 = int_to_ptr.vmem [resolvable:$true] %s424_s23 }
  0x14   : > { %v677_v0 = vmov 0.0   ;;  %s191_s26 = scalar_select %p190_p11, %s667_s15, 1  ;;  %v678_v1 = vmov 0   ;;  %v212_v2 = vld [vmem:[%s864_s2 + $0x10] sm:$0xff]  ;;  %v210_v3 = vld [vmem:[%s864_s2] sm:$0xff]  ;;  %vm246_vm0 = vcmask 130048  }
  0x15   : > { %329 = vmatprep.mubr.f32.mxu0 %v677_v0  ;;  %347 = vmatprep.mubr.f32.mxu1 %v677_v0  ;;  %v204_v8 = vld [vmem:[%s863_s1] sm:$0xff]  ;;  %v207_v9 = vld [vmem:[%s863_s1 + $0x18] sm:$0xff]  ;;  %v211_v11 = vld [vmem:[%s864_s2 + $0x8] sm:$0xff]  ;;  %s813_s15 = scalar_lea.hbm %s865_s3, %s537_s21  ;;  %s599_s29 = scalar_lea.vmem %s808_s23, 768 }
  0x16   : > { %598 = vset.pattern.permute.xlu1 %v678_v1  ;;  %597 = vset.pattern.permute.xlu0 %v678_v1  ;;  %s525_s4 = sshll.u32 %s191_s26, 5  ;;  %v213_v10 = vld [vmem:[%s864_s2 + $0x18] sm:$0xff]  ;;  %v205_v12 = vld [vmem:[%s863_s1 + $0x8] sm:$0xff]  ;;  %v208_v13 = vld [vmem:[%s863_s1 + $0x20] sm:$0xff]  ;;  %p600_p12 = scmp.ne.s32.totalorder %s808_s23, %s599_s29 }
  0x17   : > { %228 = vperm.xlu1 %598, %v212_v2   ;;  %218 = vperm.xlu0 %597, %v210_v3   ;;  %s197_s7 = scalar_lea.vmem %s862_s0, %s525_s4  ;;  %v215_v14 = vld [vmem:[%s864_s2 + $0x28] sm:$0xff]  ;;  %v214_v15 = vld [vmem:[%s864_s2 + $0x20] sm:$0xff]  ;;  %v206_v16 = vld [vmem:[%s863_s1 + $0x10] sm:$0xff]  ;;  %s603_s4 = sshll.u32 %s679_s30, 4  ;;  %s604_s4 = int_to_ptr.vmem [resolvable:$false] %s603_s4 }
  0x18   : > { %v203_v4 = vld [vmem:[%s197_s7 + $0x18] sm:$0xff]  ;;  %v202_v5 = vld [vmem:[%s197_s7 + $0x10] sm:$0xff]  ;;  %v201_v6 = vld [vmem:[%s197_s7 + $0x8] sm:$0xff]  ;;  %p601_p13 = pnand %p600_p12, %p742_p4  ;;  %s605_s5 = scalar_lea.vmem %s604_s4, 1536 }
  0x19   : > { %293 = vmatprep.subr.mxu0 %v203_v4  ;;  %532 = vmatprep.subr.mxu1 %v203_v4  ;;  %v200_v7 = vld [vmem:[%s197_s7] sm:$0xff]  ;;  %v209_v17 = vld [vmem:[%s863_s1 + $0x28] sm:$0xff]  ;;  %p606_p1 = scmp.lt.s32.totalorder %s808_s23, %s604_s4  ;;  %p607_p2 = scmp.lt.s32.totalorder %s605_s5, %s599_s29 }
  0x1a   : > { %294 = vmatpush1.msra.mxu0 %v202_v5  ;;  %534 = vmatpush1.msra.mxu1 %v202_v5  ;;  %p602_p0 = pneg %p601_p13 }
  0x1b   : > { %295 = vmatprep.subr.mxu0 %v201_v6  ;;  %533 = vmatprep.subr.mxu1 %v201_v6  ;;  %p608_p3 = por %p607_p2, %p606_p1 }
  0x1c   : > { %296 = vmatpush1.msra.mxu0 %v200_v7  ;;  %535 = vmatpush1.msra.mxu1 %v200_v7 }
  0x1d   : > { %510 = vmatmul.mubr.msk.f32.vlgmr.msra.gmra.mxu0 %vm246_vm0, %v204_v8  ;;  %513 = vmatmul.mubr.msk.f32.vlgmr.msra.gmra.mxu1 %vm246_vm0, %v207_v9  ;;  %p609_p5 = pnand %p608_p3, %p602_p0 }
  0x1e   : > { %335 = vmatprep.mubr.f32.mxu0 %v677_v0  ;;  %353 = vmatprep.mubr.f32.mxu1 %v677_v0 }
  0x1f   : > { %233 = vperm.xlu1 %598, %v213_v10   ;;  %223 = vperm.xlu0 %597, %v211_v11  }
  0x21   : > { %511 = vmatmul.mubr.msk.f32.gmra.mxu0 %vm246_vm0, %v205_v12  ;;  %514 = vmatmul.mubr.msk.f32.gmra.mxu1 %vm246_vm0, %v208_v13 }
  0x22   : > { %341 = vmatprep.mubr.f32.mxu0 %v677_v0  ;;  %359 = vmatprep.mubr.f32.mxu1 %v677_v0 }
  0x23   : > { %243 = vperm.xlu1 %598, %v215_v14   ;;  %238 = vperm.xlu0 %597, %v214_v15  }
  0x25   : > { %512 = vmatmul.mubr.msk.f32.gmra.mxu0 %vm246_vm0, %v206_v16  ;;  %515 = vmatmul.mubr.msk.f32.gmra.mxu1 %vm246_vm0, %v209_v17 }
  0x92   : > { %v219_v18 = vpop.permute.xlu0 %218  ;;  %v229_v19 = vpop.permute.xlu1 %228 }
  0x9a   : > { %v224_v20 = vpop.permute.xlu0 %223  ;;  %v234_v23 = vpop.permute.xlu1 %233 }
  0x9e   : > { %v239_v32 = vpop.permute.xlu0 %238  ;;  %v244_v43 = vpop.permute.xlu1 %243 }
  0xdd   : > { %v331_v21 = vpop.f32.mrf.mxu0  ;;  %v349_v22 = vpop.f32.mrf.mxu1 }
  0xde   : > { %v332_v26 = vadd.f32 %v331_v21, %v219_v18  ;;  %v350_v27 = vadd.f32 %v349_v22, %v234_v23 }
  0xdf   : > { %v333_v24 = vpop.f32.mrf.mxu0  ;;  %v351_v25 = vpop.f32.mrf.mxu1 }
  0xe0   : > { %v334_v28 = vadd.f32 %v333_v24, %v219_v18  ;;  %v352_v29 = vadd.f32 %v351_v25, %v234_v23 }
  0xe1   : > { %v337_v30 = vpop.f32.mrf.mxu0  ;;  %v355_v31 = vpop.f32.mrf.mxu1 }
  0xe2   : > { %v526_v33 = vpack.c.bf16 %v334_v28, %v332_v26  ;;  %v529_v34 = vpack.c.bf16 %v352_v29, %v350_v27  ;;  %v338_v37 = vadd.f32 %v337_v30, %v224_v20  ;;  %v356_v38 = vadd.f32 %v355_v31, %v239_v32 }
  0xe3   : > { %v339_v35 = vpop.f32.mrf.mxu0  ;;  %v357_v36 = vpop.f32.mrf.mxu1 }
  0xe4   : > { %402 = vst [vmem:[%s188_s19] sm:$0xff] %v526_v33  ;;  %405 = vst [vmem:[%s188_s19 + $0x18] sm:$0xff] %v529_v34  ;;  %v340_v39 = vadd.f32 %v339_v35, %v224_v20  ;;  %v358_v40 = vadd.f32 %v357_v36, %v239_v32 }
  0xe5   : > { %v343_v41 = vpop.f32.mrf.mxu0  ;;  %v361_v42 = vpop.f32.mrf.mxu1 }
  0xe6   : > { %v527_v44 = vpack.c.bf16 %v340_v39, %v338_v37  ;;  %v530_v45 = vpack.c.bf16 %v358_v40, %v356_v38  ;;  %v344_v48 = vadd.f32 %v343_v41, %v229_v19  ;;  %v362_v49 = vadd.f32 %v361_v42, %v244_v43 }
  0xe7   : > { %v345_v46 = vpop.f32.mrf.mxu0  ;;  %v363_v47 = vpop.f32.mrf.mxu1 }
  0xe8   : > { %403 = vst [vmem:[%s188_s19 + $0x8] sm:$0xff] %v527_v44  ;;  %406 = vst [vmem:[%s188_s19 + $0x20] sm:$0xff] %v530_v45  ;;  %v346_v50 = vadd.f32 %v345_v46, %v229_v19  ;;  %v364_v51 = vadd.f32 %v363_v47, %v244_v43 }
  0xea   : > { %v528_v52 = vpack.c.bf16 %v346_v50, %v344_v48  ;;  %v531_v53 = vpack.c.bf16 %v364_v51, %v362_v49 }
  0xec   : > { %404 = vst [vmem:[%s188_s19 + $0x10] sm:$0xff] %v528_v52  ;;  %407 = vst [vmem:[%s188_s19 + $0x28] sm:$0xff] %v531_v53 }
  0xed   : > { %612 = shalt.err (!%p609_p5)
}
  0xee   : > { %s613_s6 = scalar_lea.hbm %s813_s15, 768  ;;  %s617_s9 = scalar_lea.hbm %s865_s3, 1536 }
  0xef   : > { %p614_p6 = scmp.ne.s32.totalorder %s813_s15, %s613_s6  ;;  %p618_p10 = scmp.lt.s32.totalorder %s813_s15, %s865_s3 }
  0xf0   : > { %p619_p11 = scmp.lt.s32.totalorder %s617_s9, %s613_s6 }
  0xf1   : > { %p615_p7 = pnand %p614_p6, %p742_p4 }
  0xf2   : > { %p620_p12 = por %p619_p11, %p618_p10 }
  0xf3   : > { %p616_p9 = pneg %p615_p7 }
  0xf5   : > { %p621_p13 = pnand %p620_p12, %p616_p9 }
  0xf7   : > { %624 = shalt.err (!%p621_p13)
}
  0xf8   : > { %s680_s18 = smov 128   ;;  %s681_s19 = smov 8  }
  0xf9   : > { %538 = dma.vmem_to_hbm [thread:$0]  (%p742_p4), %s808_s23, 768, %s813_s15, %s817_s28, %s680_s18, %s680_s18, %s681_s19  }
  0xfa PF: > { %p544_p0 = scmp.ge.s32.totalorder %s675_s17, 2  ;;  %s439_s21 = sand.u32 1, %s655_s12  }
  0xfb   : > { %s440_s26 = scalar_lea.sflag [#allocation3], %s439_s21 }
  0xfc   : > { %p541_p1 = pnand %p544_p0, %p749_p8 }
  0xfe   : > { %p542_p2 = pneg %p541_p1 }
 0x100   : > { %650 = dma.done.wait (%p542_p2), %s440_s26, 768  }
 0x101   : > { %652 = vsyncadd (%p542_p2), %s440_s26, 4294966528  ;;  %s16_s17 = sadd.s32 1, %s675_s17   ;;  %s868_s12 = smov %s659_s13 }
 0x102   : > { %p13_p3 = scmp.ge.s32.totalorder %s16_s17, 4   ;;  %s869_s13 = smov %s663_s14 }
 0x103   : > { %s870_s14 = smov %s755_s25  ;;  %s871_s15 = smov %s671_s16 }
 0x104   : > { %s872_s16 = smov %s874_s20  ;;  %15 = sbr.rel (!%p13_p3) target bundleno = 4 (0x4), region = 67 }
 0x109   :  { %445 = vsyncpa [#allocation3], 1 }
 0x10a   :  { %447 = vsyncpa [#allocation3 + $0x1], 1 }

</bundles_post_ra>
